<compile_context>
chip_gen: v7x
topology: tpu7x:2x2x1
jax: 0.10.0
libtpu: 0.0.40
codegen_flags: <defaults>
</compile_context>

<pallas_src>
import functools

import jax
import jax.numpy as jnp
from jax.experimental import pallas as pl
from jax.experimental.pallas import tpu as pltpu


def _round_up(x, m):
    return (x + m - 1) // m * m


# ----------------------------------------------------------------------------
# Pallas kernel: complex matmul  out = x @ H
#   out_re = xr @ Hr - xi @ Hi
#   out_im = xr @ Hi + xi @ Hr
# Grid = (N_out // tn, N_in // tk); reduction axis (k) last.  The output blocks
# (index (0, j), invariant over k) act as the f32 accumulators: zeroed at k==0,
# accumulated every step, written back when j changes.
# ----------------------------------------------------------------------------
def _cplx_matmul_kernel(xr_ref, xi_ref, hr_ref, hi_ref, or_ref, oi_ref, *, tk):
    k = pl.program_id(1)

    @pl.when(k == 0)
    def _():
        or_ref[...] = jnp.zeros_like(or_ref)
        oi_ref[...] = jnp.zeros_like(oi_ref)

    if xr_ref.shape[1] == tk:
        # x block is exactly the current K-slice (tiled-x path, or single K block).
        xr = xr_ref[...]
        xi = xi_ref[...]
    else:
        # x is fully VMEM-resident: slice the current K window out of it.
        start = pl.multiple_of(k * tk, tk)
        xr = xr_ref[:, pl.ds(start, tk)]
        xi = xi_ref[:, pl.ds(start, tk)]

    h_dtype = hr_ref.dtype
    xr = xr.astype(h_dtype)
    xi = xi.astype(h_dtype)
    hr = hr_ref[...]
    hi = hi_ref[...]

    or_ref[...] += (jnp.dot(xr, hr, preferred_element_type=jnp.float32)
                    - jnp.dot(xi, hi, preferred_element_type=jnp.float32))
    oi_ref[...] += (jnp.dot(xr, hi, preferred_element_type=jnp.float32)
                    + jnp.dot(xi, hr, preferred_element_type=jnp.float32))


def _choose_tiles(n_in_p, n_out_p, max_tile=512):
    """Pick K/N tile sizes (multiples of 128) that divide the padded dims."""
    def pick(n, max_t):
        t = min(max_t, n)
        while n % t:
            t -= 128
        return t

    tk = pick(n_in_p, max_tile)
    # Keep >= 2 blocks along the parallel j axis when possible so v7x's two
    # TensorCores both get work.
    tn_cap = max_tile
    if n_out_p >= 2 * 128:
        tn_cap = min(max_tile, (n_out_p // 2) // 128 * 128)
    tn = pick(n_out_p, max(tn_cap, 128))
    return tk, tn


def complex_matmul_pallas(xr, xi, hr, hi, *, max_tile=512,
                          x_resident_budget=8 << 20):
    """xr, xi: (Bp, N_in_p) f32.  hr, hi: (N_in_p, N_out_p) bf16 (or f32)."""
    Bp, n_in_p = xr.shape
    n_in_p2, n_out_p = hr.shape
    assert n_in_p == n_in_p2
    assert Bp % 8 == 0 and n_in_p % 128 == 0 and n_out_p % 128 == 0

    tk, tn = _choose_tiles(n_in_p, n_out_p, max_tile)
    grid = (n_out_p // tn, n_in_p // tk)

    h_item = jnp.dtype(hr.dtype).itemsize
    x_resident_bytes = 2 * 2 * Bp * n_in_p * 4        # 2 arrays x 2 bufs, f32
    x_resident = x_resident_bytes <= x_resident_budget

    if x_resident:
        x_spec = pl.BlockSpec((Bp, n_in_p), lambda j, k: (0, 0))
        x_bytes = x_resident_bytes
    else:
        x_spec = pl.BlockSpec((Bp, tk), lambda j, k: (0, k))
        x_bytes = 2 * 2 * Bp * tk * 4

    h_bytes = 2 * 2 * tk * tn * h_item                 # hr+hi, double-buffered
    o_bytes = 2 * 2 * Bp * tn * 4                      # out re+im, double-buffered
    est = x_bytes + h_bytes + o_bytes
    # Raise the scoped VMEM limit (v5e default is only 16 MiB); cap well under
    # v7x's 64 MiB physical VMEM.
    vmem_limit = int(min(max(2 * est, 32 << 20), 48 << 20))

    in_specs = [
        x_spec,                                        # xr
        x_spec,                                        # xi
        pl.BlockSpec((tk, tn), lambda j, k: (k, j)),   # hr
        pl.BlockSpec((tk, tn), lambda j, k: (k, j)),   # hi
    ]
    out_specs = [
        pl.BlockSpec((Bp, tn), lambda j, k: (0, j)),
        pl.BlockSpec((Bp, tn), lambda j, k: (0, j)),
    ]
    out_shape = [
        jax.ShapeDtypeStruct((Bp, n_out_p), jnp.float32),
        jax.ShapeDtypeStruct((Bp, n_out_p), jnp.float32),
    ]
    return pl.pallas_call(
        functools.partial(_cplx_matmul_kernel, tk=tk),
        out_shape=out_shape,
        grid_spec=pltpu.PrefetchScalarGridSpec(
            num_scalar_prefetch=0,
            grid=grid,
            in_specs=in_specs,
            out_specs=out_specs,
        ),
        compiler_params=pltpu.CompilerParams(
            dimension_semantics=("parallel", "arbitrary"),
            vmem_limit_bytes=vmem_limit),
    )(xr, xi, hr, hi)


# ----------------------------------------------------------------------------
# LightPropagation operator construction (deterministic, plain-JAX glue).
# Rayleigh–Sommerfeld point-to-point diffraction kernel:
#   w(r) = (z / r^2) * (1/(2*pi*r) + 1/(i*lambda)) * exp(i*2*pi*r/lambda) * dA
# ----------------------------------------------------------------------------
def build_rs_propagation_matrix(dim_in, dim_out, pixel_size, wavelength,
                                layer_distance, samples_per_pixel=1,
                                propagation_method="rayleigh_sommerfeld"):
    assert propagation_method == "rayleigh_sommerfeld"
    del samples_per_pixel  # TODO(synk): sub-pixel supersampling not modeled.

    def plane_coords(n):
        idx = jnp.arange(n, dtype=jnp.float32) - (n - 1) / 2.0
        return idx * pixel_size

    xin = plane_coords(dim_in)
    xout = plane_coords(dim_out)
    Yin, Xin = jnp.meshgrid(xin, xin, indexing="ij")
    Yout, Xout = jnp.meshgrid(xout, xout, indexing="ij")
    pin = jnp.stack([Xin.reshape(-1), Yin.reshape(-1)], axis=-1)     # (N_in, 2)
    pout = jnp.stack([Xout.reshape(-1), Yout.reshape(-1)], axis=-1)  # (N_out, 2)

    dx = pin[:, None, 0] - pout[None, :, 0]
    dy = pin[:, None, 1] - pout[None, :, 1]
    z = jnp.float32(layer_distance)
    r = jnp.sqrt(dx * dx + dy * dy + z * z)                          # (N_in, N_out)

    two_pi = 2.0 * jnp.pi
    amp = (z / (r * r)) * (pixel_size * pixel_size)
    phase = two_pi * r / wavelength
    cosr, sinr = jnp.cos(phase), jnp.sin(phase)
    a = 1.0 / (two_pi * r)                 # real part of the prefactor
    b = -1.0 / wavelength                  # imag part of the prefactor (1/(i*l))
    h_re = amp * (a * cosr - b * sinr)
    h_im = amp * (a * sinr + b * cosr)
    return h_re.astype(jnp.float32), h_im.astype(jnp.float32)        # (N_in, N_out)


def prepare_propagation_params(dim_in, dim_out, pixel_size, wavelength,
                               layer_distance, samples_per_pixel,
                               propagation_method, *, h_dtype=jnp.bfloat16,
                               lane_mult=128):
    h_re, h_im = build_rs_propagation_matrix(
        dim_in, dim_out, pixel_size, wavelength, layer_distance,
        samples_per_pixel, propagation_method)
    n_in, n_out = h_re.shape
    n_in_p = _round_up(n_in, lane_mult)
    n_out_p = _round_up(n_out, lane_mult)
    pad = ((0, n_in_p - n_in), (0, n_out_p - n_out))
    h_re_p = jnp.pad(h_re, pad).astype(h_dtype)
    h_im_p = jnp.pad(h_im, pad).astype(h_dtype)
    return {
        "dim_in": dim_in, "dim_out": dim_out,
        "n_in": n_in, "n_out": n_out,
        "H_re": h_re_p, "H_im": h_im_p,          # padded, bf16 (HBM traffic /2)
        "H_re_f32": h_re, "H_im_f32": h_im,      # unpadded f32 (reference only)
    }


def base_layer_forward(field_re, field_im, params):
    """field_{re,im}: (B, dim_in, dim_in) f32 -> (B, dim_out, dim_out) complex64."""
    B = field_re.shape[0]
    dim_in, dim_out = params["dim_in"], params["dim_out"]
    n_in, n_out = params["n_in"], params["n_out"]
    hr, hi = params["H_re"], params["H_im"]
    n_in_p, n_out_p = hr.shape

    xr = field_re.reshape(B, n_in).astype(jnp.float32)
    xi = field_im.reshape(B, n_in).astype(jnp.float32)

    # Pad batch to a multiple of 8 (f32 sublanes / MXU rows) and the flattened
    # spatial axis to the padded lane-multiple used for H.
    Bp = _round_up(max(B, 8), 8)
    xr = jnp.pad(xr, ((0, Bp - B), (0, n_in_p - n_in)))
    xi = jnp.pad(xi, ((0, Bp - B), (0, n_in_p - n_in)))

    or_, oi_ = complex_matmul_pallas(xr, xi, hr, hi)
    out = or_[:B, :n_out] + 1j * oi_[:B, :n_out]
    return out.reshape(B, dim_out, dim_out)


if __name__ == "__main__":
    # Physical / layer hyperparameters (deterministic, in-script).
    dim_in = 16
    dim_out = 16
    pixel_size = 8e-6
    wavelength = 532e-9
    layer_distance = 0.04
    samples_per_pixel = 1
    propagation_method = "rayleigh_sommerfeld"

    params = prepare_propagation_params(
        dim_in, dim_out, pixel_size, wavelength, layer_distance,
        samples_per_pixel, propagation_method)

    # Deterministic example input field (complex, stored as re/im).
    B = 2
    key = jax.random.PRNGKey(0)
    k1, k2 = jax.random.split(key)
    field_re = jax.random.normal(k1, (B, dim_in, dim_in), dtype=jnp.float32)
    field_im = jax.random.normal(k2, (B, dim_in, dim_in), dtype=jnp.float32)

    out = base_layer_forward(field_re, field_im, params)
    out = jax.block_until_ready(out)

    n_in = dim_in * dim_in
    n_out = dim_out * dim_out

    # (1) Tight check against a reference using the SAME bf16-quantized
    #     operands (tests the kernel's tiling / accumulation, not quantization).
    xr_q = field_re.reshape(B, n_in).astype(jnp.bfloat16).astype(jnp.float32)
    xi_q = field_im.reshape(B, n_in).astype(jnp.bfloat16).astype(jnp.float32)
    hr_q = params["H_re"][:n_in, :n_out].astype(jnp.float32)
    hi_q = params["H_im"][:n_in, :n_out].astype(jnp.float32)
    ref_q = ((xr_q + 1j * xi_q) @ (hr_q + 1j * hi_q)).reshape(B, dim_out, dim_out)
    assert jnp.allclose(out, ref_q, rtol=1e-2, atol=1e-4), "mismatch vs bf16 reference"

    # (2) Loose check against the full-precision f32 physics reference
    #     (bounds the bf16 quantization error of the RS weights).
    x_c = (field_re + 1j * field_im).reshape(B, n_in)
    H_c = params["H_re_f32"] + 1j * params["H_im_f32"]
    ref_f32 = (x_c @ H_c).reshape(B, dim_out, dim_out)
    assert jnp.allclose(out, ref_f32, rtol=5e-2, atol=5e-3), "mismatch vs f32 reference"

    print("KERNEL_OK")
</pallas_src>

<mosaic_0001>
module attributes {stable_mosaic.version = 11 : i64} {
  func.func @_cplx_matmul_kernel(%arg0: i32, %arg1: i32, %arg2: memref<8x256xf32, #tpu.memory_space<vmem>>, %arg3: memref<8x256xf32, #tpu.memory_space<vmem>>, %arg4: memref<256x128xbf16, #tpu.memory_space<vmem>>, %arg5: memref<256x128xbf16, #tpu.memory_space<vmem>>, %arg6: memref<8x128xf32, #tpu.memory_space<vmem>>, %arg7: memref<8x128xf32, #tpu.memory_space<vmem>>) attributes {dimension_semantics = [#tpu.dimension_semantics<parallel>, #tpu.dimension_semantics<arbitrary>], iteration_bounds = array<i64: 2, 1>, scalar_prefetch = 0 : i64, scratch_operands = 0 : i64, tpu.core_type = #tpu.core_type<tc>, window_params = [{pipeline_mode = #tpu.pipeline_mode<synchronous>, transform_indices = @transform_0, window_bounds = array<i64: 8, 256>}, {pipeline_mode = #tpu.pipeline_mode<synchronous>, transform_indices = @transform_1, window_bounds = array<i64: 8, 256>}, {transform_indices = @transform_2, window_bounds = array<i64: 256, 128>}, {transform_indices = @transform_3, window_bounds = array<i64: 256, 128>}, {transform_indices = @transform_4, window_bounds = array<i64: 8, 128>}, {transform_indices = @transform_5, window_bounds = array<i64: 8, 128>}]} {
    %c0_i32 = arith.constant 0 : i32
    %0 = arith.cmpi eq, %arg1, %c0_i32 : i32
    %1 = arith.extui %0 : i1 to i32
    %c0_i32_0 = arith.constant 0 : i32
    %2 = arith.cmpi ne, %1, %c0_i32_0 : i32
    scf.if %2 {
      %cst_19 = arith.constant 0.000000e+00 : f32
      %21 = vector.broadcast %cst_19 : f32 to vector<8x128xf32>
      %c0_20 = arith.constant 0 : index
      %c0_21 = arith.constant 0 : index
      %22 = vector.load %arg6[%c0_20, %c0_21] : memref<8x128xf32, #tpu.memory_space<vmem>>, vector<8x128xf32>
      tpu.vector_store %arg6[%c0_20, %c0_21], %21 {strides = array<i32>} : memref<8x128xf32, #tpu.memory_space<vmem>>, vector<8x128xf32>,
      %cst_22 = arith.constant 0.000000e+00 : f32
      %23 = vector.broadcast %cst_22 : f32 to vector<8x128xf32>
      %c0_23 = arith.constant 0 : index
      %c0_24 = arith.constant 0 : index
      %24 = vector.load %arg7[%c0_23, %c0_24] : memref<8x128xf32, #tpu.memory_space<vmem>>, vector<8x128xf32>
      tpu.vector_store %arg7[%c0_23, %c0_24], %23 {strides = array<i32>} : memref<8x128xf32, #tpu.memory_space<vmem>>, vector<8x128xf32>,
    } else {
    }
    %c0 = arith.constant 0 : index
    %c0_1 = arith.constant 0 : index
    %3 = vector.load %arg2[%c0, %c0_1] : memref<8x256xf32, #tpu.memory_space<vmem>>, vector<8x256xf32>
    %c0_2 = arith.constant 0 : index
    %c0_3 = arith.constant 0 : index
    %4 = vector.load %arg3[%c0_2, %c0_3] : memref<8x256xf32, #tpu.memory_space<vmem>>, vector<8x256xf32>
    %5 = arith.truncf %3 : vector<8x256xf32> to vector<8x256xbf16>
    %6 = arith.truncf %4 : vector<8x256xf32> to vector<8x256xbf16>
    %c0_4 = arith.constant 0 : index
    %c0_5 = arith.constant 0 : index
    %7 = vector.load %arg4[%c0_4, %c0_5] : memref<256x128xbf16, #tpu.memory_space<vmem>>, vector<256x128xbf16>
    %c0_6 = arith.constant 0 : index
    %c0_7 = arith.constant 0 : index
    %8 = vector.load %arg5[%c0_6, %c0_7] : memref<256x128xbf16, #tpu.memory_space<vmem>>, vector<256x128xbf16>
    %c0_8 = arith.constant 0 : index
    %c0_9 = arith.constant 0 : index
    %9 = vector.load %arg6[%c0_8, %c0_9] : memref<8x128xf32, #tpu.memory_space<vmem>>, vector<8x128xf32>
    %cst = arith.constant dense<0.000000e+00> : vector<8x128xf32>
    %10 = tpu.matmul %5, %7, %cst {dimension_numbers = #tpu.dot_dimension_numbers<[1], [0], [0], [1], [0, 0, 1, 1], [], []>} : vector<8x256xbf16>, vector<256x128xbf16>, vector<8x128xf32> -> vector<8x128xf32>
    %cst_10 = arith.constant dense<0.000000e+00> : vector<8x128xf32>
    %11 = tpu.matmul %6, %8, %cst_10 {dimension_numbers = #tpu.dot_dimension_numbers<[1], [0], [0], [1], [0, 0, 1, 1], [], []>} : vector<8x256xbf16>, vector<256x128xbf16>, vector<8x128xf32> -> vector<8x128xf32>
    %12 = arith.subf %10, %11 : vector<8x128xf32>
    %13 = arith.addf %9, %12 : vector<8x128xf32>
    %c0_11 = arith.constant 0 : index
    %c0_12 = arith.constant 0 : index
    %14 = vector.load %arg6[%c0_11, %c0_12] : memref<8x128xf32, #tpu.memory_space<vmem>>, vector<8x128xf32>
    tpu.vector_store %arg6[%c0_11, %c0_12], %13 {strides = array<i32>} : memref<8x128xf32, #tpu.memory_space<vmem>>, vector<8x128xf32>,
    %c0_13 = arith.constant 0 : index
    %c0_14 = arith.constant 0 : index
    %15 = vector.load %arg7[%c0_13, %c0_14] : memref<8x128xf32, #tpu.memory_space<vmem>>, vector<8x128xf32>
    %cst_15 = arith.constant dense<0.000000e+00> : vector<8x128xf32>
    %16 = tpu.matmul %5, %8, %cst_15 {dimension_numbers = #tpu.dot_dimension_numbers<[1], [0], [0], [1], [0, 0, 1, 1], [], []>} : vector<8x256xbf16>, vector<256x128xbf16>, vector<8x128xf32> -> vector<8x128xf32>
    %cst_16 = arith.constant dense<0.000000e+00> : vector<8x128xf32>
    %17 = tpu.matmul %6, %7, %cst_16 {dimension_numbers = #tpu.dot_dimension_numbers<[1], [0], [0], [1], [0, 0, 1, 1], [], []>} : vector<8x256xbf16>, vector<256x128xbf16>, vector<8x128xf32> -> vector<8x128xf32>
    %18 = arith.addf %16, %17 : vector<8x128xf32>
    %19 = arith.addf %15, %18 : vector<8x128xf32>
    %c0_17 = arith.constant 0 : index
    %c0_18 = arith.constant 0 : index
    %20 = vector.load %arg7[%c0_17, %c0_18] : memref<8x128xf32, #tpu.memory_space<vmem>>, vector<8x128xf32>
    tpu.vector_store %arg7[%c0_17, %c0_18], %19 {strides = array<i32>} : memref<8x128xf32, #tpu.memory_space<vmem>>, vector<8x128xf32>,
    return
  }
  func.func @transform_0(%arg0: i32, %arg1: i32) -> (i32, i32) {
    %c0_i32 = arith.constant 0 : i32
    %c0_i32_0 = arith.constant 0 : i32
    %c0_i32_1 = arith.constant 0 : i32
    return %c0_i32, %c0_i32_0 : i32, i32
  }
  func.func @transform_1(%arg0: i32, %arg1: i32) -> (i32, i32) {
    %c0_i32 = arith.constant 0 : i32
    %c0_i32_0 = arith.constant 0 : i32
    %c0_i32_1 = arith.constant 0 : i32
    return %c0_i32, %c0_i32_0 : i32, i32
  }
  func.func @transform_2(%arg0: i32, %arg1: i32) -> (i32, i32) {
    %c0_i32 = arith.constant 0 : i32
    return %arg1, %arg0 : i32, i32
  }
  func.func @transform_3(%arg0: i32, %arg1: i32) -> (i32, i32) {
    %c0_i32 = arith.constant 0 : i32
    return %arg1, %arg0 : i32, i32
  }
  func.func @transform_4(%arg0: i32, %arg1: i32) -> (i32, i32) {
    %c0_i32 = arith.constant 0 : i32
    %c0_i32_0 = arith.constant 0 : i32
    return %c0_i32, %arg0 : i32, i32
  }
  func.func @transform_5(%arg0: i32, %arg1: i32) -> (i32, i32) {
    %c0_i32 = arith.constant 0 : i32
    %c0_i32_0 = arith.constant 0 : i32
    return %c0_i32, %arg0 : i32, i32
  }
}

</mosaic_0001>

<bundles_post_ra>
// kernel: tpu_custom_call.1
= control target key start
LH: loop header
LB: loop body
LE: loop exit
PB: predicated region body
PF: predicated region fallthrough
CT: control target
= control target key end

     0   :  { %s1945_s0 = inlined_call_operand.hbm [shape: f32[8,256], index: 0, kind: input, shape index: {}]   ;;  %s1946_s1 = inlined_call_operand.hbm [shape: f32[8,256], index: 1, kind: input, shape index: {}]   ;;  %s1947_s2 = inlined_call_operand.hbm [shape: bf16[256,256], index: 2, kind: input, shape index: {}]   ;;  %s1948_s3 = inlined_call_operand.hbm [shape: bf16[256,256], index: 3, kind: input, shape index: {}]   ;;  %s1949_s4 = inlined_call_operand.hbm [shape: f32[8,256], index: 4, kind: output, shape index: {0}]   ;;  %s1950_s5 = inlined_call_operand.hbm [shape: f32[8,256], index: 5, kind: output, shape index: {1}]  }
   0x1   :  { %1966 = sst [smem:[#allocation23_spill]] %s1945_s0 }
   0x2   :  { %1967 = sst [smem:[#allocation24_spill]] %s1947_s2 }
   0x3   :  { %11 = vsyncpa [#allocation3], 0 }
   0x4   :  { %12 = vsyncpa [#allocation6], 0 }
   0x5   :  { %13 = vsyncpa [#allocation4], 0 }
   0x6   :  { %15 = vsyncpa [#allocation4 + $0x1], 0 }
   0x7   :  { %16 = vsyncpa [#allocation11], 0 }
   0x8   :  { %18 = vsyncpa [#allocation11 + $0x1], 0  ;;  %s1510_s18 = smov 0   ;;  %s1512_s19 = smov 0  }
   0x9   :  { %s1514_s20 = smov 0   ;;  %s1516_s21 = smov 0  }
   0xa   :  { %s1518_s22 = smov 0   ;;  %s1520_s23 = smov 0  }
   0xb LB: > { %1968 = sst [smem:[#allocation17_spill]] %s1449_s18  ;;  %s1541_s24 = sadd.s32 4294967295, %s1469_s23   ;;  %s1469_s23 = sphi %s1520_s23, %s24_s23   ;;  %s1465_s22 = sphi %s1518_s22, %s2011_s22   ;;  %s1461_s21 = sphi %s1516_s21, %s2010_s21   ;;  %s1457_s20 = sphi %s1514_s20, %s2006_s20   ;;  %s1453_s19 = sphi %s1512_s19, %s2009_s19   ;;  %s1449_s18 = sphi %s1510_s18, %s2008_s18  }
   0xc   : > { %1969 = sst [smem:[#allocation18_spill]] %s1457_s20  ;;  %s960_s25 = sadd.s32 4294967294, %s1469_s23  }
   0xd   : > { %1970 = sst [smem:[#allocation19_spill]] %s1469_s23  ;;  %s87_s26 = sadd.s32 1, %s1457_s20 }
   0xe   : > { %p94_p0 = scmp.ne.s32.totalorder %s1457_s20, %s1453_s19  ;;  %p95_p1 = scmp.eq.s32.totalorder %s1469_s23, 0 }
   0xf   : > { %p100_p2 = scmp.ne.s32.totalorder %s1453_s19, %s1449_s18  ;;  %p1951_p3 = scmp.eq.s32.totalorder %s1541_s24, 0 }
  0x10   : > { %p152_p4 = scmp.eq.s32.totalorder %s1541_s24, 1  ;;  %p1552_p5 = por %p95_p1, %p94_p0 }
  0x11   : > { %p158_p6 = scmp.eq.s32.totalorder %s960_s25, 1  ;;  %p1558_p7 = por %p1951_p3, %p100_p2 }
  0x12   : > { %p1562_p8 = por %p152_p4, %p94_p0  ;;  %p961_p10 = scmp.ge.s32.totalorder %s1469_s23, 1 }
  0x13   : > { %s1972_s28 = scalar_select %p1558_p7, 1, 0 }
  0x14   : > { %s1973_s29 = scalar_select %p1562_p8, 1, 0 }
  0x15   : > { %p1566_p9 = por %p158_p6, %p100_p2  ;;  %p191_p11 = scmp.lt.s32.totalorder %s1469_s23, 3 }
  0x16   : > { %s1471_s7 = smov [#allocation2]   ;;  %p1141_p1 = scmp.lt.s32.totalorder %s1469_s23, 2 }
  0x17   : > { %s1974_s30 = scalar_select %p1566_p9, 1, 0 }
  0x18   : > { %p1573_p13 = pnand %p961_p10, %p191_p11  ;;  %s204_s8 = sshll.u32 %s1471_s7, 4  ;;  %s205_s8 = int_to_ptr.vmem [resolvable:$true] %s204_s8 }
  0x19   : > { %1975 = sst [smem:[#allocation20_spill]] %s1974_s30  ;;  %p1582_p4 = pnand %p1141_p1, %p1552_p5 }
  0x1a   : > { %s1976_s6 = scalar_select %p1573_p13, 1, 0 }
  0x1b   : > { %p1118_p0 = pneg %p1573_p13  ;;  %s36_s11 = sadd.s32 1, %s1465_s22 }
  0x1c   : > { %s1977_s9 = scalar_select %p1582_p4, 1, 0 }
  0x1d   : > { %p1588_p2 = pnand %p1118_p0, %p1951_p3  ;;  %p1593_p6 = scmp.ge.s32.totalorder %s36_s11, 2 }
  0x1e   : > { %s1980_s0 = sld [smem:[#allocation23_spill]] }
  0x1f   : > { %s1979_s12 = scalar_select %p1593_p6, 1, 0 }
  0x20   : > { %p1957_p10 = pneg %p1588_p2 }
  0x24   : > { %s1231_s16 = scalar_lea.hbm %s1980_s0, 256 }
  0x25   : > { %p1232_p5 = scmp.ne.s32.totalorder %s1980_s0, %s1231_s16  ;;  %p1238_p0 = scmp.lt.u32.totalorder %s1231_s16, %s1980_s0 }
  0x27   : > { %p1234_p11 = pnand %p1957_p10, %p1232_p5 }
  0x29   : > { %p1235_p1 = pneg %p1234_p11 }
  0x2b   : > { %p1240_p12 = pnand %p1238_p0, %p1235_p1 }
  0x2d   : > { %1243 = shalt.err (!%p1240_p12)
}
  0x2e   : > { %s1244_s13 = scalar_lea.vmem %s205_s8, 256  ;;  %p1252_p7 = scmp.lt.s32.totalorder %s205_s8, %s205_s8 }
  0x2f   : > { %p1245_p3 = scmp.ne.s32.totalorder %s205_s8, %s1244_s13  ;;  %p1253_p13 = scmp.lt.s32.totalorder %s1244_s13, %s1244_s13 }
  0x31   : > { %p1247_p9 = pnand %p1245_p3, %p1957_p10  ;;  %p1254_p4 = por %p1253_p13, %p1252_p7 }
  0x33   : > { %p1248_p8 = pneg %p1247_p9 }
  0x35   : > { %p1255_p6 = pnand %p1254_p4, %p1248_p8 }
  0x37   : > { %1258 = shalt.err (!%p1255_p6)
}
  0x38   : > { %1121 = dma.hbm_to_vmem [thread:$0]  (!%p1588_p2), %s1980_s0, 256, %s205_s8, [#allocation3]  }
  0x39   : > { %p1981_p3 = scmp.ne.s32.totalorder %s1979_s12, 0  ;;  %s228_s13 = sand.u32 1, %s1457_s20  }
  0x3a   : > { %s1627_s17 = sshll.u32 %s228_s13, 7  ;;  %s1956_s25 = sshll.u32 %s1465_s22, 6 }
  0x3b   : > { %s2013_s11 = smov (%p1981_p3, %s36_s11), 0  ;;  %s230_s27 = scalar_lea.vmem [#allocation7], %s1627_s17 }
  0x3c   : > { %1982 = sst [smem:[#allocation21_spill]] %s2013_s11  ;;  %s83_s16 = ssub.s32 %s1465_s22, %s2013_s11 }
  0x3d   : > { %p85_p7 = scmp.eq.s32.totalorder %s83_s16, 0  ;;  %s239_s7 = sshll.u32 %s230_s27, 4  ;;  %s1643_s7 = int_to_ptr.vmem [resolvable:$true] %s239_s7 }
  0x3e   : > { %s1984_s2 = sld [smem:[#allocation24_spill]]  ;;  %s1985_s13 = sand.u32 1, %s1469_s23  }
  0x3f   : > { %s1634_s14 = scalar_select %p85_p7, %s1457_s20, %s87_s26  }
  0x40   : > { %s1647_s16 = scalar_lea.sflag [#allocation3], %s1985_s13  ;;  %p1986_p9 = scmp.ne.s32.totalorder %s1977_s9, 0 }
  0x41   : > { %1983 = sst [smem:[#allocation22_spill]] %s1634_s14 }
  0x42   : > { %p1964_p12 = pneg %p1986_p9 }
  0x44   : > { %s1641_s12 = scalar_lea.hbm %s1984_s2, %s1956_s25  ;;  %s1264_s15 = scalar_lea.hbm %s1984_s2, 4096 }
  0x45   : > { %s1259_s0 = scalar_lea.hbm %s1641_s12, 2048  ;;  %p1265_p6 = scmp.lt.u32.totalorder %s1641_s12, %s1984_s2 }
  0x46   : > { %p1260_p8 = scmp.ne.s32.totalorder %s1641_s12, %s1259_s0  ;;  %p1266_p5 = scmp.lt.u32.totalorder %s1264_s15, %s1259_s0 }
  0x47   : > { %p1268_p1 = scmp.lt.u32.totalorder %s1259_s0, %s1641_s12 }
  0x48   : > { %p1262_p13 = pnand %p1964_p12, %p1260_p8  ;;  %p1267_p11 = por %p1266_p5, %p1265_p6 }
  0x4a   : > { %p1263_p4 = pneg %p1262_p13  ;;  %p1269_p0 = por %p1268_p1, %p1267_p11 }
  0x4c   : > { %p1270_p3 = pnand %p1269_p0, %p1263_p4 }
  0x4e   : > { %1273 = shalt.err (!%p1270_p3)
}
  0x4f   : > { %s1274_s13 = scalar_lea.vmem %s1643_s7, 2048  ;;  %s1472_s26 = smov [#allocation7]  }
  0x50   : > { %p1275_p7 = scmp.ne.s32.totalorder %s1643_s7, %s1274_s13  ;;  %s1279_s27 = sshll.u32 %s1472_s26, 4  ;;  %s1280_s27 = int_to_ptr.vmem [resolvable:$false] %s1279_s27 }
  0x51   : > { %s1281_s25 = scalar_lea.vmem %s1280_s27, 4096  ;;  %p1282_p10 = scmp.lt.s32.totalorder %s1643_s7, %s1280_s27 }
  0x52   : > { %p1277_p8 = pnand %p1275_p7, %p1964_p12  ;;  %p1283_p6 = scmp.lt.s32.totalorder %s1281_s25, %s1274_s13 }
  0x54   : > { %p1278_p13 = pneg %p1277_p8  ;;  %p1284_p5 = por %p1283_p6, %p1282_p10 }
  0x56   : > { %p1285_p11 = pnand %p1284_p5, %p1278_p13 }
  0x58   : > { %1288 = shalt.err (!%p1285_p11)
}
  0x59   : > { %s1473_s0 = smov 128   ;;  %s1474_s15 = smov 64  }
  0x5a   : > { %s1475_s8 = smov 4   ;;  %s1476_s26 = smov [#allocation5]  }
  0x5b   : > { %1128 = dma.hbm_to_vmem [thread:$0]  (!%p1986_p9), %s1641_s12, 2048, %s1643_s7, %s1647_s16, %s1473_s0, %s1474_s15, %s1475_s8  }
  0x5c   : > { %s215_s27 = sshll.u32 %s1476_s26, 4  ;;  %s1987_s13 = sshll.u32 %s1465_s22, 6  ;;  %s216_s27 = int_to_ptr.vmem [resolvable:$true] %s215_s27 }
  0x5d   : > { %s1683_s11 = scalar_lea.hbm %s1948_s3, %s1987_s13  ;;  %s1289_s23 = scalar_lea.hbm %s1946_s1, 256 }
  0x5e   : > { %p1290_p10 = scmp.ne.s32.totalorder %s1946_s1, %s1289_s23  ;;  %p1988_p4 = pneg %p1588_p2 }
  0x5f   : > { %p1296_p3 = scmp.lt.u32.totalorder %s1289_s23, %s1946_s1 }
  0x60   : > { %p1292_p1 = pnand %p1290_p10, %p1988_p4 }
  0x62   : > { %p1293_p0 = pneg %p1292_p1 }
  0x64   : > { %p1298_p7 = pnand %p1296_p3, %p1293_p0 }
  0x66   : > { %1301 = shalt.err (!%p1298_p7)
}
  0x67   : > { %s1302_s2 = scalar_lea.vmem %s216_s27, 256  ;;  %p1989_p13 = pmov %p1988_p4 }
  0x68   : > { %p1303_p8 = scmp.ne.s32.totalorder %s216_s27, %s1302_s2  ;;  %p1310_p11 = scmp.lt.s32.totalorder %s216_s27, %s216_s27 }
  0x69   : > { %p1311_p12 = scmp.lt.s32.totalorder %s1302_s2, %s1302_s2 }
  0x6a   : > { %p1305_p6 = pnand %p1303_p8, %p1989_p13 }
  0x6b   : > { %p1312_p9 = por %p1311_p12, %p1310_p11 }
  0x6c   : > { %p1306_p5 = pneg %p1305_p6 }
  0x6e   : > { %p1313_p4 = pnand %p1312_p9, %p1306_p5 }
  0x70   : > { %1316 = shalt.err (!%p1313_p4)
}
  0x71   : > { %1124 = dma.hbm_to_vmem [thread:$0]  (!%p1588_p2), %s1946_s1, 256, %s216_s27, [#allocation6]  }
  0x72   : > { %s253_s23 = scalar_lea.vmem [#allocation8], %s1627_s17  ;;  %s1317_s14 = scalar_lea.hbm %s1683_s11, 2048 }
  0x73   : > { %s262_s30 = sshll.u32 %s253_s23, 4  ;;  %p1318_p12 = scmp.ne.s32.totalorder %s1683_s11, %s1317_s14  ;;  %s1706_s30 = int_to_ptr.vmem [resolvable:$true] %s262_s30 }
  0x74   : > { %p1990_p9 = scmp.ne.s32.totalorder %s1977_s9, 0  ;;  %s1322_s13 = scalar_lea.hbm %s1948_s3, 4096 }
  0x75   : > { %p1323_p3 = scmp.lt.u32.totalorder %s1683_s11, %s1948_s3  ;;  %p1324_p7 = scmp.lt.u32.totalorder %s1322_s13, %s1317_s14 }
  0x76   : > { %p1991_p10 = pneg %p1990_p9  ;;  %p1326_p8 = scmp.lt.u32.totalorder %s1317_s14, %s1683_s11 }
  0x77   : > { %p1325_p2 = por %p1324_p7, %p1323_p3 }
  0x78   : > { %p1320_p1 = pnand %p1318_p12, %p1991_p10 }
  0x79   : > { %p1327_p13 = por %p1326_p8, %p1325_p2 }
  0x7a   : > { %p1321_p0 = pneg %p1320_p1 }
  0x7c   : > { %p1328_p6 = pnand %p1327_p13, %p1321_p0 }
  0x7e   : > { %1331 = shalt.err (!%p1328_p6)
}
  0x7f   : > { %s1332_s17 = scalar_lea.vmem %s1706_s30, 2048  ;;  %p1992_p11 = pmov %p1991_p10 }
  0x80   : > { %p1333_p5 = scmp.ne.s32.totalorder %s1706_s30, %s1332_s17  ;;  %s1477_s27 = smov [#allocation8]  }
  0x81   : > { %s1337_s12 = sshll.u32 %s1477_s27, 4  ;;  %s1338_s12 = int_to_ptr.vmem [resolvable:$false] %s1337_s12 }
  0x82   : > { %p1335_p4 = pnand %p1333_p5, %p1992_p11  ;;  %s1339_s2 = scalar_lea.vmem %s1338_s12, 4096 }
  0x83   : > { %p1340_p10 = scmp.lt.s32.totalorder %s1706_s30, %s1338_s12  ;;  %p1341_p1 = scmp.lt.s32.totalorder %s1339_s2, %s1332_s17 }
  0x84   : > { %p1336_p12 = pneg %p1335_p4 }
  0x85   : > { %p1342_p3 = por %p1341_p1, %p1340_p10 }
  0x87   : > { %p1343_p7 = pnand %p1342_p3, %p1336_p12 }
  0x89   : > { %1346 = shalt.err (!%p1343_p7)
}
  0x8a   : > { %1131 = dma.hbm_to_vmem [thread:$0]  (!%p1990_p9), %s1683_s11, 2048, %s1706_s30, %s1647_s16, %s1473_s0, %s1474_s15, %s1475_s8  }
  0x8b   : > { %p1993_p0 = scmp.ne.s32.totalorder %s1976_s6, 0 }
  0x8c   : > { %p1994_p2 = scmp.eq.s32.totalorder (!%p1993_p0), %s1541_s24, 0 }
  0x8d   : > { %274 = sbr.rel (%p1993_p0) target bundleno = 455 (0x1c7), region = 36 }
  0x94   : > { %1428 = dma.done.wait (%p1994_p2), [#allocation3], 256   ;;  %p1995_p8 = pmov %p1994_p2 }
  0x95   : > { %p1996_p13 = pmov %p1994_p2 }
  0x96   : > { %1430 = vsyncadd (%p1995_p8), [#allocation3], 4294967040 }
  0x97   : > { %1432 = dma.done.wait (%p1996_p13), [#allocation6], 256   ;;  %p1997_p6 = pmov %p1994_p2 }
  0x98   : > { %s284_s9 = sand.u32 1, %s1541_s24   ;;  %s1747_s11 = sand.u32 1, %s1453_s19  }
  0x99   : > { %1434 = vsyncadd (%p1997_p6), [#allocation6], 4294967040  ;;  %s972_s6 = sshll.u32 %s1747_s11, 7  ;;  %s285_s16 = scalar_lea.sflag [#allocation3], %s284_s9 }
  0x9a   : > { %s1750_s0 = scalar_lea.vmem [#allocation7], %s972_s6  ;;  %p1998_p9 = scmp.ne.s32.totalorder %s1972_s28, 0 }
  0x9c   : > { %1436 = dma.done.wait (%p1998_p9), %s285_s16, 4096  }
  0x9d   : > { %1438 = vsyncadd (%p1998_p9), %s285_s16, 4294963200  ;;  %v1757_v0 = vld [vmem:[%s1750_s0 + $0x40] sm:$0xff]   ;;  %s1759_s24 = scalar_lea.vmem [#allocation8], %s972_s6  ;;  %v1774_v4 = vld [vmem:[%s1750_s0 + $0x48] sm:$0xff]   ;;  %s974_s28 = sshll.u32 %s1747_s11, 3 }
  0x9e   : > { %v1762_v1 = vld [vmem:[%s1759_s24 + $0x40] sm:$0xff]   ;;  %1014 = vmatprep.subr.bf16.mxu0 %v1757_v0  ;;  %v1778_v5 = vld [vmem:[%s1759_s24 + $0x48] sm:$0xff]   ;;  %v1790_v8 = vld [vmem:[%s1750_s0 + $0x50] sm:$0xff]   ;;  %s1010_s15 = sshll.u32 %s1461_s21, 7  ;;  %s326_s8 = scalar_lea.vmem [#allocation9], %s974_s28 }
  0x9f   : > { %v1766_v2 = vld [vmem:[%s1750_s0] sm:$0xff]   ;;  %1036 = vmatprep.subr.bf16.mxu1 %v1762_v1  ;;  %v1782_v6 = vld [vmem:[%s1750_s0 + $0x8] sm:$0xff]   ;;  %v1794_v9 = vld [vmem:[%s1759_s24 + $0x50] sm:$0xff]   ;;  %s793_s18 = sshll.u32 %s326_s8, 4  ;;  %s1863_s30 = scalar_lea.hbm %s1949_s4, %s1010_s15  ;;  %s1865_s18 = int_to_ptr.vmem [resolvable:$true] %s793_s18 }
  0xa0   : > { %v1770_v3 = vld [vmem:[%s1759_s24] sm:$0xff]   ;;  %1015 = vmatpush3.bf16.msra.mxu0 %v1766_v2  ;;  %v1786_v7 = vld [vmem:[%s1759_s24 + $0x8] sm:$0xff]   ;;  %v1798_v10 = vld [vmem:[%s1750_s0 + $0x10] sm:$0xff]   ;;  %s775_s14 = scalar_lea.sflag [#allocation4], %s1747_s11  ;;  %s1347_s10 = scalar_lea.vmem %s1865_s18, 128 }
  0xa1   : > { %1037 = vmatpush3.bf16.msra.mxu1 %v1770_v3  ;;  %1016 = vmatprep.subr.bf16.mxu0 %v1774_v4  ;;  %v1802_v11 = vld [vmem:[%s1759_s24 + $0x10] sm:$0xff]   ;;  %v1806_v12 = vld [vmem:[%s1750_s0 + $0x58] sm:$0xff]   ;;  %v1215_v16 = vld [vmem:[%s1750_s0 + $0x60] sm:$0xff]   ;;  %p1348_p5 = scmp.ne.s32.totalorder %s1865_s18, %s1347_s10  ;;  %p1999_p11 = scmp.ne.s32.totalorder %s1973_s29, 0 }
  0xa2   : > { %1038 = vmatprep.subr.bf16.mxu1 %v1778_v5  ;;  %v1810_v13 = vld [vmem:[%s1759_s24 + $0x58] sm:$0xff]   ;;  %v1216_v17 = vld [vmem:[%s1759_s24 + $0x60] sm:$0xff]   ;;  %v1219_v20 = vld [vmem:[%s1750_s0 + $0x68] sm:$0xff]   ;;  %s1478_s26 = smov [#allocation9]  }
  0xa3   : > { %v1814_v14 = vld [vmem:[%s1750_s0 + $0x18] sm:$0xff]   ;;  %v1217_v18 = vld [vmem:[%s1750_s0 + $0x20] sm:$0xff]   ;;  %v1220_v21 = vld [vmem:[%s1759_s24 + $0x68] sm:$0xff]   ;;  %p1349_p4 = pnand %p1348_p5, %p1999_p11  ;;  %s1351_s13 = sshll.u32 %s1478_s26, 4  ;;  %s1352_s13 = int_to_ptr.vmem [resolvable:$false] %s1351_s13 }
  0xa4   : > { %1017 = vmatpush3.bf16.msra.mxu0 %v1782_v6  ;;  %v1818_v15 = vld [vmem:[%s1759_s24 + $0x18] sm:$0xff]   ;;  %v1218_v19 = vld [vmem:[%s1759_s24 + $0x20] sm:$0xff]   ;;  %v1221_v22 = vld [vmem:[%s1750_s0 + $0x28] sm:$0xff]   ;;  %s1353_s25 = scalar_lea.vmem %s1352_s13, 256  ;;  %p1354_p10 = scmp.lt.s32.totalorder %s1865_s18, %s1352_s13 }
  0xa5   : > { %1039 = vmatpush3.bf16.msra.mxu1 %v1786_v7  ;;  %1018 = vmatprep.subr.bf16.mxu0 %v1790_v8  ;;  %v1222_v23 = vld [vmem:[%s1759_s24 + $0x28] sm:$0xff]   ;;  %v1223_v24 = vld [vmem:[%s1750_s0 + $0x70] sm:$0xff]   ;;  %v1227_v28 = vld [vmem:[%s1750_s0 + $0x78] sm:$0xff]   ;;  %p1350_p12 = pneg %p1349_p4  ;;  %p1355_p1 = scmp.lt.s32.totalorder %s1353_s25, %s1347_s10 }
  0xa6   : > { %1040 = vmatprep.subr.bf16.mxu1 %v1794_v9  ;;  %v1224_v25 = vld [vmem:[%s1759_s24 + $0x70] sm:$0xff]   ;;  %v1228_v29 = vld [vmem:[%s1759_s24 + $0x78] sm:$0xff]   ;;  %v344_v32 = vld [vmem:[#allocation2 + $0x8] sm:$0xff] }
  0xa7   : > { %v1225_v26 = vld [vmem:[%s1750_s0 + $0x30] sm:$0xff]   ;;  %v1229_v30 = vld [vmem:[%s1750_s0 + $0x38] sm:$0xff]   ;;  %v343_v34 = vld [vmem:[#allocation2] sm:$0xff]  ;;  %v348_v35 = vpack.c.bf16 %v344_v32, %v344_v32  ;;  %p1356_p3 = por %p1355_p1, %p1354_p10 }
  0xa8   : > { %1019 = vmatpush3.bf16.msra.mxu0 %v1798_v10  ;;  %v1226_v27 = vld [vmem:[%s1759_s24 + $0x30] sm:$0xff]   ;;  %v1230_v31 = vld [vmem:[%s1759_s24 + $0x38] sm:$0xff]   ;;  %v347_v37 = vpack.c.bf16 %v343_v34, %v343_v34 }
  0xa9   : > { %1041 = vmatpush3.bf16.msra.mxu1 %v1802_v11  ;;  %1020 = vmatprep.subr.bf16.mxu0 %v1806_v12  ;;  %v346_v33 = vld [vmem:[#allocation5 + $0x8] sm:$0xff]  ;;  %v345_v38 = vld [vmem:[#allocation5] sm:$0xff]  ;;  %p1357_p7 = pnand %p1356_p3, %p1350_p12 }
  0xaa   : > { %1042 = vmatprep.subr.bf16.mxu1 %v1810_v13  ;;  %v350_v36 = vpack.c.bf16 %v346_v33, %v346_v33  ;;  %v349_v39 = vpack.c.bf16 %v345_v38, %v345_v38  ;;  %544 = vmatprep.mubr.bf16.mxu0 %v348_v35 }
  0xac   : > { %1021 = vmatpush3.bf16.msra.mxu0 %v1814_v14  ;;  %680 = vmatprep.mubr.bf16.mxu1 %v350_v36 }
  0xad   : > { %1043 = vmatpush3.bf16.msra.mxu1 %v1818_v15  ;;  %1022 = vmatprep.subr.bf16.mxu0 %v1215_v16 }
  0xae   : > { %1044 = vmatprep.subr.bf16.mxu1 %v1216_v17 }
  0xb0   : > { %1023 = vmatpush3.bf16.msra.mxu0 %v1217_v18 }
  0xb1   : > { %1045 = vmatpush3.bf16.msra.mxu1 %v1218_v19  ;;  %1024 = vmatprep.subr.bf16.mxu0 %v1219_v20 }
  0xb2   : > { %1046 = vmatprep.subr.bf16.mxu1 %v1220_v21 }
  0xb4   : > { %1025 = vmatpush3.bf16.msra.mxu0 %v1221_v22 }
  0xb5   : > { %1047 = vmatpush3.bf16.msra.mxu1 %v1222_v23  ;;  %1026 = vmatprep.subr.bf16.mxu0 %v1223_v24 }
  0xb6   : > { %1048 = vmatprep.subr.bf16.mxu1 %v1224_v25 }
  0xb8   : > { %1027 = vmatpush3.bf16.msra.mxu0 %v1225_v26 }
  0xb9   : > { %1049 = vmatpush3.bf16.msra.mxu1 %v1226_v27  ;;  %1028 = vmatprep.subr.bf16.mxu0 %v1227_v28 }
  0xba   : > { %1050 = vmatprep.subr.bf16.mxu1 %v1228_v29 }
  0xbc   : > { %1029 = vmatpush3.bf16.msra.mxu0 %v1229_v30 }
  0xbd   : > { %1051 = vmatpush3.bf16.msra.mxu1 %v1230_v31  ;;  %1058 = vmatprep.subr.bf16.mxu0 %v1757_v0 }
  0xbe   : > { %1080 = vmatprep.subr.bf16.mxu1 %v1762_v1 }
  0xbf   : > { %545 = vmatmul.mubr.bf16.vlgmr.msra.gmra.mrb[0].mxu0 %v347_v37 }
  0xc0   : > { %681 = vmatmul.mubr.bf16.vlgmr.msra.gmra.mrb[0].mxu1 %v349_v39  ;;  %1059 = vmatpush3.bf16.msra.mxu0 %v1766_v2 }
  0xc1   : > { %1081 = vmatpush3.bf16.msra.mxu1 %v1770_v3  ;;  %1060 = vmatprep.subr.bf16.mxu0 %v1774_v4 }
  0xc2   : > { %1082 = vmatprep.subr.bf16.mxu1 %v1778_v5  ;;  %724 = vmatprep.mubr.bf16.mxu0 %v350_v36 }
  0xc3   : > { %764 = vmatprep.mubr.bf16.mxu1 %v348_v35 }
  0xc4   : > { %1061 = vmatpush3.bf16.msra.mxu0 %v1782_v6 }
  0xc5   : > { %1083 = vmatpush3.bf16.msra.mxu1 %v1786_v7  ;;  %1062 = vmatprep.subr.bf16.mxu0 %v1790_v8 }
  0xc6   : > { %1084 = vmatprep.subr.bf16.mxu1 %v1794_v9 }
  0xc8   : > { %1063 = vmatpush3.bf16.msra.mxu0 %v1798_v10 }
  0xc9   : > { %1085 = vmatpush3.bf16.msra.mxu1 %v1802_v11  ;;  %1064 = vmatprep.subr.bf16.mxu0 %v1806_v12 }
  0xca   : > { %1086 = vmatprep.subr.bf16.mxu1 %v1810_v13 }
  0xcc   : > { %1065 = vmatpush3.bf16.msra.mxu0 %v1814_v14 }
  0xcd   : > { %1087 = vmatpush3.bf16.msra.mxu1 %v1818_v15  ;;  %1066 = vmatprep.subr.bf16.mxu0 %v1215_v16 }
  0xce   : > { %1088 = vmatprep.subr.bf16.mxu1 %v1216_v17 }
  0xd0   : > { %1067 = vmatpush3.bf16.msra.mxu0 %v1217_v18 }
  0xd1   : > { %1089 = vmatpush3.bf16.msra.mxu1 %v1218_v19  ;;  %1068 = vmatprep.subr.bf16.mxu0 %v1219_v20 }
  0xd2   : > { %1090 = vmatprep.subr.bf16.mxu1 %v1220_v21 }
  0xd4   : > { %1069 = vmatpush3.bf16.msra.mxu0 %v1221_v22 }
  0xd5   : > { %1091 = vmatpush3.bf16.msra.mxu1 %v1222_v23  ;;  %1070 = vmatprep.subr.bf16.mxu0 %v1223_v24 }
  0xd6   : > { %1092 = vmatprep.subr.bf16.mxu1 %v1224_v25 }
  0xd8   : > { %1071 = vmatpush3.bf16.msra.mxu0 %v1225_v26 }
  0xd9   : > { %1093 = vmatpush3.bf16.msra.mxu1 %v1226_v27  ;;  %1072 = vmatprep.subr.bf16.mxu0 %v1227_v28 }
  0xda   : > { %1094 = vmatprep.subr.bf16.mxu1 %v1228_v29 }
  0xdc   : > { %1073 = vmatpush3.bf16.msra.mxu0 %v1229_v30 }
  0xdd   : > { %1095 = vmatpush3.bf16.msra.mxu1 %v1230_v31 }
  0xdf   : > { %725 = vmatmul.mubr.bf16.vlgmr.msra.gmra.mrb[4].mxu0 %v349_v39 }
  0xe0   : > { %765 = vmatmul.mubr.bf16.vlgmr.msra.gmra.mrb[4].mxu1 %v347_v37 }
 0x192   : > { %v1030_v40 = vpop.f32.mrb[0].mxu0 }
 0x193   : > { %v1052_v41 = vpop.f32.mrb[0].mxu1  ;;  %v1031_v42 = vpop.f32.mrb[1].mxu0 }
 0x194   : > { %v1053_v43 = vpop.f32.mrb[1].mxu1  ;;  %v1032_v44 = vadd.f32 %v1031_v42, %v1030_v40  ;;  %v1033_v46 = vpop.f32.mrb[2].mxu0 }
 0x195   : > { %v1054_v45 = vadd.f32 %v1053_v43, %v1052_v41  ;;  %v1055_v47 = vpop.f32.mrb[2].mxu1  ;;  %v1034_v48 = vpop.f32.mrb[3].mxu0 }
 0x196   : > { %v1056_v49 = vpop.f32.mrb[3].mxu1 }
 0x197   : > { %v688_v50 = vsub.f32 %v1032_v44, %v1054_v45 }
 0x199   : > { %690 = vst [vmem:[%s326_s8] sm:$0xff] %v688_v50 }
 0x19a   : > { %1360 = shalt.err (!%p1357_p7)
}
 0x19b   : > { %s1361_s7 = scalar_lea.hbm %s1863_s30, 128  ;;  %s1365_s12 = scalar_lea.hbm %s1949_s4, 256 }
 0x19c   : > { %p1362_p0 = scmp.ne.s32.totalorder %s1863_s30, %s1361_s7  ;;  %p1366_p13 = scmp.lt.u32.totalorder %s1863_s30, %s1949_s4 }
 0x19d   : > { %p1367_p6 = scmp.lt.u32.totalorder %s1365_s12, %s1361_s7  ;;  %p1369_p5 = scmp.lt.u32.totalorder %s1361_s7, %s1863_s30 }
 0x19e   : > { %p1363_p2 = pnand %p1362_p0, %p1999_p11 }
 0x19f   : > { %p1368_p9 = por %p1367_p6, %p1366_p13 }
 0x1a0   : > { %p1364_p8 = pneg %p1363_p2 }
 0x1a1   : > { %p1370_p4 = por %p1369_p5, %p1368_p9 }
 0x1a3   : > { %p1371_p12 = pnand %p1370_p4, %p1364_p8 }
 0x1a5   : > { %1374 = shalt.err (!%p1371_p12)
}
 0x1a6   : > { %1114 = dma.vmem_to_hbm [thread:$0]  (%p1999_p11), %s1865_s18, 128, %s1863_s30, %s775_s14  }
 0x1a7   : > { %s333_s6 = scalar_lea.vmem [#allocation10], %s974_s28  ;;  %s1896_s8 = scalar_lea.hbm %s1950_s5, %s1010_s15 }
 0x1a8   : > { %s806_s16 = sshll.u32 %s333_s6, 4  ;;  %s780_s18 = scalar_lea.sflag [#allocation11], %s1747_s11  ;;  %s1898_s16 = int_to_ptr.vmem [resolvable:$true] %s806_s16 }
 0x1a9   : > { %s1375_s20 = scalar_lea.vmem %s1898_s16, 128  ;;  %s1479_s28 = smov [#allocation10]  }
 0x1aa   : > { %p1376_p10 = scmp.ne.s32.totalorder %s1898_s16, %s1375_s20  ;;  %s1379_s23 = sshll.u32 %s1479_s28, 4  ;;  %s1380_s23 = int_to_ptr.vmem [resolvable:$false] %s1379_s23 }
 0x1ab   : > { %s1381_s21 = scalar_lea.vmem %s1380_s23, 256  ;;  %p1382_p7 = scmp.lt.s32.totalorder %s1898_s16, %s1380_s23 }
 0x1ac   : > { %p1377_p1 = pnand %p1376_p10, %p1999_p11  ;;  %p1383_p0 = scmp.lt.s32.totalorder %s1381_s21, %s1375_s20 }
 0x1ae   : > { %p1378_p3 = pneg %p1377_p1  ;;  %p1384_p2 = por %p1383_p0, %p1382_p7 }
 0x1b0   : > { %p1385_p8 = pnand %p1384_p2, %p1378_p3 }
 0x1b2   : > { %v1074_v51 = vpop.f32.mrb[4].mxu0 }
 0x1b3   : > { %v1096_v52 = vpop.f32.mrb[4].mxu1  ;;  %v1075_v53 = vpop.f32.mrb[5].mxu0 }
 0x1b4   : > { %v1097_v54 = vpop.f32.mrb[5].mxu1  ;;  %v1076_v55 = vadd.f32 %v1075_v53, %v1074_v51  ;;  %v1077_v57 = vpop.f32.mrb[6].mxu0 }
 0x1b5   : > { %v1098_v56 = vadd.f32 %v1097_v54, %v1096_v52  ;;  %v1099_v58 = vpop.f32.mrb[6].mxu1  ;;  %v1078_v59 = vpop.f32.mrb[7].mxu0 }
 0x1b6   : > { %v1100_v60 = vpop.f32.mrb[7].mxu1 }
 0x1b7   : > { %v767_v61 = vadd.f32 %v1098_v56, %v1076_v55 }
 0x1b9   : > { %773 = vst [vmem:[%s333_s6] sm:$0xff] %v767_v61 }
 0x1ba   : > { %1388 = shalt.err (!%p1385_p8)
}
 0x1bb   : > { %s1389_s11 = scalar_lea.hbm %s1896_s8, 128  ;;  %s1393_s14 = scalar_lea.hbm %s1950_s5, 256 }
 0x1bc   : > { %p1390_p13 = scmp.ne.s32.totalorder %s1896_s8, %s1389_s11  ;;  %p1394_p5 = scmp.lt.u32.totalorder %s1896_s8, %s1950_s5 }
 0x1bd   : > { %p1395_p4 = scmp.lt.u32.totalorder %s1393_s14, %s1389_s11  ;;  %p1397_p10 = scmp.lt.u32.totalorder %s1389_s11, %s1896_s8 }
 0x1be   : > { %p1391_p6 = pnand %p1390_p13, %p1999_p11 }
 0x1bf   : > { %p1396_p12 = por %p1395_p4, %p1394_p5 }
 0x1c0   : > { %p1392_p9 = pneg %p1391_p6 }
 0x1c1   : > { %p1398_p1 = por %p1397_p10, %p1396_p12 }
 0x1c3   : > { %p1399_p3 = pnand %p1398_p1, %p1392_p9 }
 0x1c5   : > { %1402 = shalt.err (!%p1399_p3)
}
 0x1c6   : > { %1115 = dma.vmem_to_hbm [thread:$0]  (%p1999_p11), %s1898_s16, 128, %s1896_s8, %s780_s18  }
 0x1c7 PF: > { %s2000_s13 = sld [smem:[#allocation17_spill]]  ;;  %s2001_s25 = sld [smem:[#allocation20_spill]] }
 0x1c8   : > { %s2002_s7 = sld [smem:[#allocation19_spill]] }
 0x1cd   : > { %s818_s17 = sand.u32 1, %s2000_s13   ;;  %p2003_p7 = scmp.ne.s32.totalorder %s2001_s25, 0 }
 0x1ce   : > { %p2004_p0 = scmp.ge.s32.totalorder %s2002_s7, 2  ;;  %s819_s27 = scalar_lea.sflag [#allocation4], %s818_s17 }
 0x1d0   : > { %p1133_p2 = pnand %p2004_p0, %p2003_p7 }
 0x1d2   : > { %1440 = dma.done.wait (!%p1133_p2), %s819_s27, 128  }
 0x1d3   : > { %1442 = vsyncadd (!%p1133_p2), %s819_s27, 4294967168  ;;  %s828_s12 = scalar_lea.sflag [#allocation11], %s818_s17 }
 0x1d4   : > { %1444 = dma.done.wait (!%p1133_p2), %s828_s12, 128  }
 0x1d5   : > { %1446 = vsyncadd (!%p1133_p2), %s828_s12, 4294967168  ;;  %s24_s23 = sadd.s32 1, %s2002_s7   ;;  %s2005_s29 = sld [smem:[#allocation18_spill]] }
 0x1d6   : > { %p21_p8 = scmp.ge.s32.totalorder %s24_s23, 4   ;;  %s2006_s20 = sld [smem:[#allocation22_spill]] }
 0x1d7   : > { %s2007_s2 = sld [smem:[#allocation21_spill]]  ;;  %s2008_s18 = smov %s1453_s19 }
 0x1d8   : > { %s2010_s21 = smov %s1465_s22  ;;  %23 = sbr.rel (!%p21_p8) target bundleno = 11 (0xb), region = 120 }
 0x1db   : > { %s2009_s19 = smov %s2005_s29 }
 0x1dd   : > { %s2011_s22 = smov %s2007_s2 }
 0x1df   :  { %833 = vsyncpa [#allocation3], 1 }
 0x1e0   :  { %835 = vsyncpa [#allocation3 + $0x1], 1 }
 0x1e1   :  { %836 = vsyncpa [#allocation6], 1 }
 0x1e2   :  { %837 = vsyncpa [#allocation4], 1 }
 0x1e3   :  { %839 = vsyncpa [#allocation4 + $0x1], 1 }
 0x1e4   :  { %840 = vsyncpa [#allocation11], 1 }
 0x1e5   :  { %842 = vsyncpa [#allocation11 + $0x1], 1 }

</bundles_post_ra>
